<compile_context>
chip_gen: v7x
topology: tpu7x:2x2x1
jax: 0.10.0
libtpu: 0.0.40
codegen_flags: <defaults>
</compile_context>

<pallas_src>
import functools

import jax
import jax.numpy as jnp
from jax.experimental import pallas as pl
from jax.experimental.pallas import tpu as pltpu

_LANES = 128            # vreg lane width (fast axis)
_SUBLANES = 8           # f32 sublanes per vreg (slow axis)
_DEF_BLOCK_ROWS = 1024  # 1024 x 128 f32 = 512 KiB / tile (128K elems; v7x-safe)


def _softplus_bias_kernel(b_ref, o_ref, *, eps):
    """Elementwise softplus(b) + eps on one (tile_rows, 128) block."""
    b = b_ref[...]
    # Numerically stable softplus: max(x, 0) + log1p(exp(-|x|)).
    # Exactly one exp + one log1p per element (minimum EUP work); the rest is
    # cheap VPU work that co-issues with the EUP slot.
    sp = jnp.maximum(b, 0.0) + jnp.log1p(jnp.exp(-jnp.abs(b)))
    o_ref[...] = sp + eps


def init_variance_encoder_params(shape, init=0.1, channelwise=True, eps=1e-5):
    """Deterministic parameter init mirroring VarianceEncoder.__init__."""
    init_val = jnp.log(jnp.exp(jnp.asarray(init - eps, jnp.float32)) - 1.0)
    if channelwise:
        if len(shape) == 4:
            b_shape = (1, shape[1], 1, 1)
        elif len(shape) == 3:
            b_shape = (1, 1, shape[2])
        else:
            raise ValueError()
    else:
        b_shape = tuple(shape)
    return jnp.full(b_shape, init_val, dtype=jnp.float32)


def variance_encoder_forward(b, eps=1e-5, *, block_rows=_DEF_BLOCK_ROWS):
    """Pallas implementation of VarianceEncoder.forward: softplus(b) + eps.

    Depends only on the parameter `b` (the module's input x never enters the
    computation), so call this once per parameter update, not per batch.
    """
    orig_shape = b.shape
    orig_dtype = b.dtype

    # Compute in f32 regardless of storage dtype (handles bf16 params cleanly).
    flat = b.reshape(-1).astype(jnp.float32)
    n = flat.shape[0]

    # Lay out as a sublane- and lane-dense (rows, 128) slab, rows a multiple
    # of 8, and round rows up so tile_rows divides exactly (no partial blocks,
    # no masked partial stores).
    rows_needed = pl.cdiv(n, _LANES)
    rows_needed = pl.cdiv(rows_needed, _SUBLANES) * _SUBLANES
    tile_rows = min(block_rows, rows_needed)
    num_blocks = pl.cdiv(rows_needed, tile_rows)
    rows = num_blocks * tile_rows

    pad = rows * _LANES - n
    slab = (flat if pad == 0 else jnp.pad(flat, (0, pad))).reshape(rows, _LANES)

    # Scoped VMEM: double-buffered in + out tiles, plus headroom.
    tile_bytes = tile_rows * _LANES * 4
    vmem_limit = int(4 * tile_bytes + (1 << 20))

    out_slab = pl.pallas_call(
        functools.partial(_softplus_bias_kernel, eps=float(eps)),
        out_shape=jax.ShapeDtypeStruct((rows, _LANES), jnp.float32),
        grid=(num_blocks,),
        in_specs=[pl.BlockSpec((tile_rows, _LANES), lambda i: (i, 0),
                               memory_space=pltpu.MemorySpace.VMEM)],
        out_specs=pl.BlockSpec((tile_rows, _LANES), lambda i: (i, 0),
                               memory_space=pltpu.MemorySpace.VMEM),
        compiler_params=pltpu.CompilerParams(
            dimension_semantics=("parallel",),
            vmem_limit_bytes=vmem_limit),
    )(slab)

    return out_slab.reshape(-1)[:n].reshape(orig_shape).astype(orig_dtype)


if __name__ == "__main__":
    # Small shapes consistent with the module: NCHW input (batch, C, H, W).
    shape = (2, 4, 16, 16)
    eps = 1e-5

    key = jax.random.PRNGKey(0)
    # x reflects the module interface only; forward() never uses it, so it is
    # deliberately not threaded through the Pallas wrapper.
    x = jax.random.normal(key, shape, dtype=jnp.float32)
    b = init_variance_encoder_params(shape, init=0.1, channelwise=True, eps=eps)

    out = jax.block_until_ready(variance_encoder_forward(b, eps=eps))

    # Pure-JAX reference: softplus(b) + eps; at init this should be ~0.1.
    ref = jnp.logaddexp(0.0, b) + eps
    assert out.shape == (1, shape[1], 1, 1), out.shape
    assert jnp.allclose(out, ref, atol=1e-6), (out, ref)
    assert jnp.allclose(out, 0.1, atol=1e-5), out

    # Second check: 3-D shape branch + channel count not a multiple of 128
    # (exercises the padding / slab-layout path).
    shape3 = (2, 8, 300)
    b3 = init_variance_encoder_params(shape3, init=0.25, channelwise=True, eps=eps)
    out3 = jax.block_until_ready(variance_encoder_forward(b3, eps=eps))
    ref3 = jnp.logaddexp(0.0, b3) + eps
    assert out3.shape == (1, 1, 300), out3.shape
    assert jnp.allclose(out3, ref3, atol=1e-6), (out3, ref3)
    assert jnp.allclose(out3, 0.25, atol=1e-5), out3

    print("KERNEL_OK")
</pallas_src>

<mosaic_0001>
module attributes {stable_mosaic.version = 11 : i64} {
  func.func @_softplus_bias_kernel(%arg0: i32, %arg1: memref<8x128xf32, #tpu.memory_space<vmem>>, %arg2: memref<8x128xf32, #tpu.memory_space<vmem>>) attributes {dimension_semantics = [#tpu.dimension_semantics<parallel>], iteration_bounds = array<i64: 1>, scalar_prefetch = 0 : i64, scratch_operands = 0 : i64, tpu.core_type = #tpu.core_type<tc>, window_params = [{transform_indices = @transform_0, window_bounds = array<i64: 8, 128>}, {transform_indices = @transform_1, window_bounds = array<i64: 8, 128>}]} {
    %c0 = arith.constant 0 : index
    %c0_0 = arith.constant 0 : index
    %0 = vector.load %arg1[%c0, %c0_0] : memref<8x128xf32, #tpu.memory_space<vmem>>, vector<8x128xf32>
    %cst = arith.constant 0.000000e+00 : f32
    %1 = vector.broadcast %cst : f32 to vector<8x128xf32>
    %2 = arith.maximumf %0, %1 : vector<8x128xf32>
    %3 = math.absf %0 : vector<8x128xf32>
    %cst_1 = arith.constant 0.000000e+00 : f32
    %4 = vector.broadcast %cst_1 : f32 to vector<8x128xf32>
    %5 = arith.subf %4, %3 : vector<8x128xf32>
    %6 = math.exp %5 : vector<8x128xf32>
    %7 = math.log1p %6 : vector<8x128xf32>
    %8 = arith.addf %2, %7 : vector<8x128xf32>
    %cst_2 = arith.constant 9.99999974E-6 : f32
    %9 = vector.broadcast %cst_2 : f32 to vector<8x128xf32>
    %10 = arith.addf %8, %9 : vector<8x128xf32>
    %c0_3 = arith.constant 0 : index
    %c0_4 = arith.constant 0 : index
    %11 = vector.load %arg2[%c0_3, %c0_4] : memref<8x128xf32, #tpu.memory_space<vmem>>, vector<8x128xf32>
    tpu.vector_store %arg2[%c0_3, %c0_4], %10 {strides = array<i32>} : memref<8x128xf32, #tpu.memory_space<vmem>>, vector<8x128xf32>,
    return
  }
  func.func @transform_0(%arg0: i32) -> (i32, i32) {
    %c0_i32 = arith.constant 0 : i32
    %c0_i32_0 = arith.constant 0 : i32
    return %arg0, %c0_i32 : i32, i32
  }
  func.func @transform_1(%arg0: i32) -> (i32, i32) {
    %c0_i32 = arith.constant 0 : i32
    %c0_i32_0 = arith.constant 0 : i32
    return %arg0, %c0_i32 : i32, i32
  }
}

</mosaic_0001>

<bundles_post_ra>
// kernel: tpu_custom_call.1
= control target key start
LH: loop header
LB: loop body
LE: loop exit
PB: predicated region body
PF: predicated region fallthrough
CT: control target
= control target key end

     0   :  { %6 = vsyncpa [#allocation3], 0  ;;  %s144_s0 = inlined_call_operand.hbm [shape: f32[8,128], index: 0, kind: input, shape index: {}]   ;;  %s145_s1 = inlined_call_operand.hbm [shape: f32[8,128], index: 1, kind: output, shape index: {}]  }
   0x1   :  { %7 = vsyncpa [#allocation4], 0  ;;  %s108_s6 = smov [#allocation2]   ;;  %s60_s10 = scalar_lea.hbm %s144_s0, 128 }
   0x2   :  { %s14_s7 = sshll.u32 %s108_s6, 4  ;;  %p61_p0 = scmp.ne.s32.totalorder %s144_s0, %s60_s10  ;;  %s15_s7 = int_to_ptr.vmem [resolvable:$true] %s14_s7 }
   0x3   :  { %p64_p1 = scmp.lt.u32.totalorder %s60_s10, %s144_s0 }
   0x5   :  { %p66_p2 = pnand %p64_p1, %p61_p0 }
   0x7   :  { %69 = shalt.err (!%p66_p2)
}
   0x8   :  { %s70_s15 = scalar_lea.vmem %s15_s7, 128  ;;  %p75_p4 = scmp.lt.s32.totalorder %s15_s7, %s15_s7 }
   0x9   :  { %p71_p3 = scmp.ne.s32.totalorder %s15_s7, %s70_s15  ;;  %p76_p5 = scmp.lt.s32.totalorder %s70_s15, %s70_s15 }
   0xb   :  { %p77_p6 = por %p76_p5, %p75_p4 }
   0xd   :  { %p78_p7 = pnand %p77_p6, %p71_p3 }
   0xf   :  { %81 = shalt.err (!%p78_p7)
}
  0x10   :  { %17 = dma.hbm_to_vmem [thread:$0]  %s144_s0, 128, %s15_s7, [#allocation3]  }
  0x11   :  { %104 = dma.done.wait [#allocation3], 128  }
  0x12   :  { %105 = vsyncadd [#allocation3], 4294967168  ;;  %v21_v0 = vld [vmem:[#allocation2] sm:$0xff]  ;;  %s109_s0 = smov [#allocation5]  }
  0x13   :  { %v23_v1 = vand.u32 2147483647, %v21_v0  ;;  %v22_v11 = vmax.f32 %v21_v0, 0.0  ;;  %s45_s18 = sshll.u32 %s109_s0, 4  ;;  %s46_s18 = int_to_ptr.vmem [resolvable:$true] %s45_s18 }
  0x14   :  { %s82_s19 = scalar_lea.vmem %s46_s18, 128  ;;  %p87_p9 = scmp.lt.s32.totalorder %s46_s18, %s46_s18 }
  0x15   :  { %v24_v2 = vsub.f32 0.0, %v23_v1  ;;  %p83_p8 = scmp.ne.s32.totalorder %s46_s18, %s82_s19  ;;  %p88_p10 = scmp.lt.s32.totalorder %s82_s19, %s82_s19 }
  0x17   :  { %v25_v3 = vmul.f32 1.442695, %v24_v2  ;;  %p89_p11 = por %p88_p10, %p87_p9 }
  0x19   :  { %56 = vpow2.f32 %v25_v3  ;;  %p90_p12 = pnand %p89_p11, %p83_p8 }
  0x23   :  { %v57_v4 = vpop.eup %56 }
  0x24   :  { %v27_v5 = vadd.f32 1.0, %v57_v4  ;;  %v30_v6 = vmul.f32 -0.5, %v57_v4  ;;  %v33_v8 = vand.u32 2147483647, %v57_v4 }
  0x26   :  { %58 = vlog2.f32 %v27_v5  ;;  %v31_v7 = vadd.f32 1.0, %v30_v6  ;;  %vm34_vm0 = vcmp.lt.f32.partialorder %v33_v8, 0.0004427343 }
  0x28   :  { %v32_v9 = vmul.f32 %v57_v4, %v31_v7 }
  0x30   :  { %v59_v10 = vpop.eup %58 }
  0x31   :  { %v29_v12 = vmul.f32 0.6931472, %v59_v10 }
  0x33   :  { %v35_v13 = vsel %vm34_vm0, %v32_v9, %v29_v12 }
  0x34   :  { %v36_v14 = vadd.f32 %v35_v13, %v22_v11 }
  0x36   :  { %v37_v15 = vadd.f32 1e-05, %v36_v14 }
  0x38   :  { %38 = vst [vmem:[#allocation5] sm:$0xff] %v37_v15 }
  0x39   :  { %93 = shalt.err (!%p90_p12)
}
  0x3a   :  { %s94_s22 = scalar_lea.hbm %s145_s1, 128 }
  0x3b   :  { %p95_p13 = scmp.ne.s32.totalorder %s145_s1, %s94_s22  ;;  %p98_p0 = scmp.lt.u32.totalorder %s94_s22, %s145_s1 }
  0x3d   :  { %p100_p1 = pnand %p98_p0, %p95_p13 }
  0x3f   :  { %103 = shalt.err (!%p100_p1)
}
  0x40   :  { %48 = dma.vmem_to_hbm [thread:$0]  %s46_s18, 128, %s145_s1, [#allocation4]  }
  0x41   :  { %106 = dma.done.wait [#allocation4], 128  }
  0x42   :  { %107 = vsyncadd [#allocation4], 4294967168 }
  0x43   :  { %52 = vsyncpa [#allocation3], 1 }
  0x44   :  { %53 = vsyncpa [#allocation4], 1 }

</bundles_post_ra>
